<compile_context>
chip_gen: v5e
topology: v5e:2x2
jax: 0.10.0
libtpu: 0.0.40
codegen_flags: <defaults>
</compile_context>

<pallas_src>
import functools

import jax
import jax.numpy as jnp
from jax.experimental import pallas as pl
from jax.experimental.pallas import tpu as pltpu


def _round_up(x, m):
    return (x + m - 1) // m * m


def _maxout_kernel(x_ref, w_ref, b_ref, o_ref, *, num_pieces, td):
    """One (dout-tile, batch-tile) grid step.

    x_ref: (TB, D_in)     f32
    w_ref: (D_in, K*TD)   bf16 (piece index slowest within the dout tile)
    b_ref: (1, K*TD)      f32
    o_ref: (TB, TD)       f32
    """
    x = x_ref[...].astype(w_ref.dtype)            # bf16 MXU operands
    y = jnp.dot(x, w_ref[...], preferred_element_type=jnp.float32) + b_ref[...]
    acc = y[:, :td]                               # piece 0 (no -inf fill)
    for k in range(1, num_pieces):                # K-1 lane-aligned VPU max ops
        acc = jnp.maximum(acc, y[:, k * td:(k + 1) * td])
    o_ref[...] = acc.astype(o_ref.dtype)


def prepare_maxout_params(weight, bias, num_pieces, *, d_out_tile=512,
                          mxu_dtype=jnp.bfloat16):
    """One-time rearrangement of the torch nn.Linear params (hoisted out of the
    per-call path; do this at parameter-load time, not per forward).

    torch layout:   weight[d*K + k, i], bias[d*K + k]
    kernel layout:  column c = j*(K*TD) + k*TD + t   with  d = j*TD + t
    """
    K = num_pieces
    DK, D = weight.shape
    assert DK == D * K and bias.shape == (DK,)

    # Lane-dense dout tile: multiple of 128, capped so the bf16 weight block
    # (D * K * TD * 2 bytes) stays a few MiB (fits v7x's smaller VMEM budget).
    cap = ((4 * 1024 * 1024) // (D * K * 2)) // 128 * 128
    td = max(128, min(_round_up(d_out_tile, 128), _round_up(D, 128), max(cap, 128)))
    dp = _round_up(D, td)                         # padded output feature dim
    n_j = dp // td

    # (D*K, D) -> (D_out, K, D_in) -> (D_in, K, D_out)
    w = jnp.transpose(weight.reshape(D, K, D), (2, 1, 0))
    b = jnp.transpose(bias.reshape(D, K), (1, 0))          # (K, D_out)
    if dp != D:                                            # zero-pad; padded cols
        w = jnp.pad(w, ((0, 0), (0, 0), (0, dp - D)))      # are sliced off after
        b = jnp.pad(b, ((0, 0), (0, dp - D)))              # the kernel
    # Block the d axis: (D_in, K, n_j, TD) -> (D_in, n_j, K, TD) -> (D_in, n_j*K*TD)
    w = jnp.transpose(w.reshape(D, K, n_j, td), (0, 2, 1, 3)).reshape(D, n_j * K * td)
    b = jnp.transpose(b.reshape(K, n_j, td), (1, 0, 2)).reshape(1, n_j * K * td)

    return w.astype(mxu_dtype), b.astype(jnp.float32), td


def maxout_fwd(x, w_blocked, b_blocked, num_pieces, td, *, batch_tile=256):
    """out[b, d] = max_k (x @ W_k.T + b_k)[b, d]   (torch MaxOut.forward)."""
    B, D_in = x.shape
    K = num_pieces
    n_j = w_blocked.shape[1] // (K * td)
    dp = n_j * td

    tb = B if B <= batch_tile else batch_tile     # 256 (multiple of 8) or full B
    n_b = pl.cdiv(B, tb)

    kernel = functools.partial(_maxout_kernel, num_pieces=K, td=td)

    out = pl.pallas_call(
        kernel,
        out_shape=jax.ShapeDtypeStruct((B, dp), x.dtype),
        # dout tiles outer, batch tiles inner: the weight block's index_map is
        # constant along the inner axis -> weight stays resident in VMEM across
        # all batch tiles while x/out DMAs are pipelined.
        grid=(n_j, n_b),
        in_specs=[
            pl.BlockSpec((tb, D_in), lambda j, i: (i, 0)),
            pl.BlockSpec((D_in, K * td), lambda j, i: (0, j)),
            pl.BlockSpec((1, K * td), lambda j, i: (0, j)),
        ],
        out_specs=pl.BlockSpec((tb, td), lambda j, i: (i, j)),
        compiler_params=pltpu.CompilerParams(
            dimension_semantics=("parallel", "parallel"),
            vmem_limit_bytes=32 * 1024 * 1024,
        ),
    )(x, w_blocked, b_blocked)

    return out if dp == D_in else out[:, :D_in]   # drop lane-padding columns


def maxout(x, weight, bias, num_pieces):
    """Convenience one-shot wrapper (prefer prepare_* once + maxout_fwd)."""
    w_blocked, b_blocked, td = prepare_maxout_params(weight, bias, num_pieces)
    return maxout_fwd(x, w_blocked, b_blocked, num_pieces, td)


if __name__ == "__main__":
    B, D, K = 8, 32, 5  # batch, input_dim, num_pieces

    key = jax.random.PRNGKey(0)
    kx, kw, kb = jax.random.split(key, 3)

    # Deterministic nn.Linear-style init: U(-1/sqrt(D), 1/sqrt(D)).
    bound = 1.0 / jnp.sqrt(jnp.float32(D))
    x = jax.random.normal(kx, (B, D), dtype=jnp.float32)
    weight = jax.random.uniform(kw, (D * K, D), jnp.float32, -bound, bound)
    bias = jax.random.uniform(kb, (D * K,), jnp.float32, -bound, bound)

    # Parameter rearrangement done once (parameter-load time), not per call.
    w_blocked, b_blocked, td = prepare_maxout_params(weight, bias, K)
    out = maxout_fwd(x, w_blocked, b_blocked, K, td)
    out = jax.block_until_ready(out)

    # Pure-JAX reference of the torch forward pass (f32).
    ref = jnp.max((x @ weight.T + bias).reshape(B, D, K), axis=2)
    assert out.shape == (B, D)
    # bf16 MXU operands with f32 accumulation: allow ~1e-2-level deviation.
    assert jnp.allclose(out, ref, atol=2e-2, rtol=2e-2), "mismatch vs reference"

    print("KERNEL_OK")
</pallas_src>

<mosaic_0001>
module attributes {stable_mosaic.version = 11 : i64} {
  func.func @_maxout_kernel(%arg0: i32, %arg1: i32, %arg2: memref<8x32xf32, #tpu.memory_space<vmem>>, %arg3: memref<32x640xbf16, #tpu.memory_space<vmem>>, %arg4: memref<1x640xf32, #tpu.memory_space<vmem>>, %arg5: memref<8x128xf32, #tpu.memory_space<vmem>>) attributes {dimension_semantics = [#tpu.dimension_semantics<parallel>, #tpu.dimension_semantics<parallel>], iteration_bounds = array<i64: 1, 1>, scalar_prefetch = 0 : i64, scratch_operands = 0 : i64, tpu.core_type = #tpu.core_type<tc>, window_params = [{transform_indices = @transform_0, window_bounds = array<i64: 8, 32>}, {transform_indices = @transform_1, window_bounds = array<i64: 32, 640>}, {transform_indices = @transform_2, window_bounds = array<i64: 1, 640>}, {transform_indices = @transform_3, window_bounds = array<i64: 8, 128>}]} {
    %c0 = arith.constant 0 : index
    %c0_0 = arith.constant 0 : index
    %0 = vector.load %arg2[%c0, %c0_0] : memref<8x32xf32, #tpu.memory_space<vmem>>, vector<8x32xf32>
    %1 = arith.truncf %0 : vector<8x32xf32> to vector<8x32xbf16>
    %c0_1 = arith.constant 0 : index
    %c0_2 = arith.constant 0 : index
    %2 = vector.load %arg3[%c0_1, %c0_2] : memref<32x640xbf16, #tpu.memory_space<vmem>>, vector<32x640xbf16>
    %cst = arith.constant dense<0.000000e+00> : vector<8x640xf32>
    %3 = tpu.matmul %1, %2, %cst {dimension_numbers = #tpu.dot_dimension_numbers<[1], [0], [0], [1], [0, 0, 1, 1], [], []>} : vector<8x32xbf16>, vector<32x640xbf16>, vector<8x640xf32> -> vector<8x640xf32>
    %c0_3 = arith.constant 0 : index
    %c0_4 = arith.constant 0 : index
    %4 = vector.load %arg4[%c0_3, %c0_4] : memref<1x640xf32, #tpu.memory_space<vmem>>, vector<1x640xf32>
    %5 = vector.broadcast %4 : vector<1x640xf32> to vector<8x640xf32>
    %6 = arith.addf %3, %5 : vector<8x640xf32>
    %7 = vector.extract_strided_slice %6 {offsets = [0, 0], sizes = [8, 128], strides = [1, 1]} : vector<8x640xf32> to vector<8x128xf32>
    %8 = vector.extract_strided_slice %6 {offsets = [0, 128], sizes = [8, 128], strides = [1, 1]} : vector<8x640xf32> to vector<8x128xf32>
    %9 = arith.maximumf %7, %8 : vector<8x128xf32>
    %10 = vector.extract_strided_slice %6 {offsets = [0, 256], sizes = [8, 128], strides = [1, 1]} : vector<8x640xf32> to vector<8x128xf32>
    %11 = arith.maximumf %9, %10 : vector<8x128xf32>
    %12 = vector.extract_strided_slice %6 {offsets = [0, 384], sizes = [8, 128], strides = [1, 1]} : vector<8x640xf32> to vector<8x128xf32>
    %13 = arith.maximumf %11, %12 : vector<8x128xf32>
    %14 = vector.extract_strided_slice %6 {offsets = [0, 512], sizes = [8, 128], strides = [1, 1]} : vector<8x640xf32> to vector<8x128xf32>
    %15 = arith.maximumf %13, %14 : vector<8x128xf32>
    %c0_5 = arith.constant 0 : index
    %c0_6 = arith.constant 0 : index
    %16 = vector.load %arg5[%c0_5, %c0_6] : memref<8x128xf32, #tpu.memory_space<vmem>>, vector<8x128xf32>
    tpu.vector_store %arg5[%c0_5, %c0_6], %15 {strides = array<i32>} : memref<8x128xf32, #tpu.memory_space<vmem>>, vector<8x128xf32>,
    return
  }
  func.func @transform_0(%arg0: i32, %arg1: i32) -> (i32, i32) {
    %c0_i32 = arith.constant 0 : i32
    %c0_i32_0 = arith.constant 0 : i32
    return %arg1, %c0_i32 : i32, i32
  }
  func.func @transform_1(%arg0: i32, %arg1: i32) -> (i32, i32) {
    %c0_i32 = arith.constant 0 : i32
    %c0_i32_0 = arith.constant 0 : i32
    return %c0_i32, %arg0 : i32, i32
  }
  func.func @transform_2(%arg0: i32, %arg1: i32) -> (i32, i32) {
    %c0_i32 = arith.constant 0 : i32
    %c0_i32_0 = arith.constant 0 : i32
    return %c0_i32, %arg0 : i32, i32
  }
  func.func @transform_3(%arg0: i32, %arg1: i32) -> (i32, i32) {
    %c0_i32 = arith.constant 0 : i32
    return %arg1, %arg0 : i32, i32
  }
}

</mosaic_0001>

<bundles_post_ra>
// kernel: tpu_custom_call.1
= control target key start
LH: loop header
LB: loop body
LE: loop exit
PB: predicated region body
PF: predicated region fallthrough
CT: control target
= control target key end

     0   :  { %8 = vsyncpa [#allocation3], 0  ;;  %s430_s0 = inlined_call_operand.hbm [shape: f32[8,32], index: 0, kind: input, shape index: {}]   ;;  %s431_s1 = inlined_call_operand.hbm [shape: bf16[32,640], index: 1, kind: input, shape index: {}]   ;;  %s432_s2 = inlined_call_operand.hbm [shape: f32[1,640], index: 2, kind: input, shape index: {}]   ;;  %s433_s3 = inlined_call_operand.hbm [shape: f32[8,128], index: 3, kind: output, shape index: {}]  }
   0x1   :  { %9 = vsyncpa [#allocation6], 0  ;;  %s26_s14 = sshll.u32 %s431_s1, 4  ;;  %s27_s14 = int_to_ptr.hbm [resolvable:$true] %s26_s14 }
   0x2   :  { %10 = vsyncpa [#allocation4], 0  ;;  %s392_s15 = smov [#allocation5]   ;;  %s16_s19 = sshll.u32 %s430_s0, 4  ;;  %s17_s19 = int_to_ptr.hbm [resolvable:$true] %s16_s19 }
   0x3   :  { %s28_s16 = sshll.u32 %s392_s15, 4  ;;  %s393_s20 = smov 320   ;;  %s29_s16 = int_to_ptr.vmem [resolvable:$true] %s28_s16 }
   0x4   :  { %s394_s21 = smov 20   ;;  %s395_s22 = smov [#allocation2]  }
   0x5   :  { %34 = dma.hbm_to_vmem [thread:$0]  %s27_s14, 1280, %s29_s16, [#allocation6], %s393_s20, %s393_s20, %s394_s21  }
   0x6   :  { %s18_s23 = sshll.u32 %s395_s22, 4  ;;  %s40_s26 = sshll.u32 %s432_s2, 4  ;;  %s19_s23 = int_to_ptr.vmem [resolvable:$true] %s18_s23  ;;  %s41_s26 = int_to_ptr.hbm [resolvable:$true] %s40_s26 }
   0x7   :  { %21 = dma.hbm_to_vmem [thread:$0]  %s17_s19, 128, %s19_s23, [#allocation3]  }
   0x8   :  { %s396_s1 = smov [#allocation7]  }
   0x9   :  { %s42_s27 = sshll.u32 %s396_s1, 4  ;;  %s43_s27 = int_to_ptr.vmem [resolvable:$true] %s42_s27 }
   0xa   :  { %45 = dma.hbm_to_vmem [thread:$0]  %s41_s26, 80, %s43_s27, [#allocation6]  }
   0xb   :  { %386 = dma.done.wait [#allocation3], 128  }
   0xc   :  { %387 = vsyncadd [#allocation3], 4294967168 }
   0xd   :  { %388 = dma.done.wait [#allocation6], 1360  }
   0xe   :  { %389 = vsyncadd [#allocation6], 4294965936  ;;  %v251_v0 = vld [vmem:[#allocation5 + $0x28] sm:$0xf]  ;;  %v281_v1 = vld [vmem:[#allocation5 + $0x38] sm:$0xf0] }
   0xf   :  { %v279_v2 = vld [vmem:[#allocation5 + $0x2c] sm:$0xf]  ;;  %v252_v3 = vor.u32 %v281_v1, %v251_v0  ;;  %v253_v4 = vld [vmem:[#allocation5 + $0x3c] sm:$0xf0]  ;;  %v259_v5 = vld [vmem:[#allocation5 + $0x30] sm:$0xf] }
  0x10   :  { %v282_v6 = vld [vmem:[#allocation5 + $0x40] sm:$0xf0]  ;;  %v256_v7 = vor.u32 %v279_v2, %v253_v4  ;;  %v280_v9 = vld [vmem:[#allocation5 + $0x34] sm:$0xf]  ;;  %v261_v10 = vld [vmem:[#allocation5 + $0x44] sm:$0xf0] }
  0x11   :  { %v260_v8 = vor.u32 %v282_v6, %v259_v5  ;;  %v231_v11 = vld [vmem:[#allocation5] sm:$0xf]  ;;  %147 = vmatpush.bf16.msra.mxu0 %v252_v3  ;;  %v264_v12 = vor.u32 %v280_v9, %v261_v10  ;;  %v276_v13 = vld [vmem:[#allocation5 + $0x10] sm:$0xf0]  ;;  %v274_v14 = vld [vmem:[#allocation5 + $0x4] sm:$0xf] }
  0x12   :  { %v233_v15 = vld [vmem:[#allocation5 + $0x14] sm:$0xf0]  ;;  %160 = vmatpush.bf16.msra.mxu1 %v256_v7  ;;  %v232_v16 = vor.u32 %v276_v13, %v231_v11  ;;  %v239_v18 = vld [vmem:[#allocation5 + $0x8] sm:$0xf]  ;;  %v277_v19 = vld [vmem:[#allocation5 + $0x18] sm:$0xf0] }
  0x13   :  { %173 = vmatpush.bf16.msra.mxu2 %v260_v8  ;;  %v236_v17 = vor.u32 %v274_v14, %v233_v15  ;;  %v275_v20 = vld [vmem:[#allocation5 + $0xc] sm:$0xf]  ;;  %186 = vmatpush.bf16.msra.mxu3 %v264_v12  ;;  %v240_v21 = vor.u32 %v277_v19, %v239_v18  ;;  %v241_v22 = vld [vmem:[#allocation5 + $0x1c] sm:$0xf0]  ;;  %v59_v23 = vld [vmem:[#allocation2] sm:$0xff]  ;;  %vm137_vm0 = vcmask 261120  }
  0x14   :  { %v267_v24 = vld [vmem:[#allocation5 + $0x38] sm:$0xf]  ;;  %v244_v25 = vor.u32 %v275_v20, %v241_v22  ;;  %v60_v26 = vpack.c.bf16 %v59_v23, %v59_v23  ;;  %v283_v27 = vld [vmem:[#allocation5 + $0x48] sm:$0xf0]  ;;  %v247_v28 = vld [vmem:[#allocation5 + $0x10] sm:$0xf] }
  0x15   :  { %v278_v29 = vld [vmem:[#allocation5 + $0x20] sm:$0xf0]  ;;  %148 = vmatpush.bf16.msra.mxu0 %v232_v16  ;;  %v268_v30 = vor.u32 %v283_v27, %v267_v24  ;;  %v73_v32 = vld [vmem:[#allocation7] sm:$0x1f]  ;;  %s397_s0 = smov [#allocation8]   ;;  %s218_s30 = sshll.u32 %s433_s3, 4  ;;  %s219_s30 = int_to_ptr.hbm [resolvable:$true] %s218_s30 }
  0x16   :  { %161 = vmatpush.bf16.msra.mxu1 %v236_v17  ;;  %v248_v31 = vor.u32 %v278_v29, %v247_v28  ;;  %v75_v35 = vperm.slane %v73_v32, 0  ;;  %v76_v36 = vperm.slane %v73_v32, 1  ;;  %v77_v37 = vperm.slane %v73_v32, 2  ;;  %s216_s2 = sshll.u32 %s397_s0, 4  ;;  %s217_s2 = int_to_ptr.vmem [resolvable:$true] %s216_s2 }
  0x17   :  { %174 = vmatpush.bf16.msra.mxu2 %v240_v21  ;;  %187 = vmatpush.bf16.msra.mxu3 %v244_v25  ;;  %v78_v44 = vperm.slane %v73_v32, 3  ;;  %v79_v49 = vperm.slane %v73_v32, 4 }
  0x18   :  { %269 = vmatmul.msk.bf16.vlgmr.msra.gmra.mxu0 %vm137_vm0, %v60_v26 }
  0x19   :  { %199 = vmatpush.bf16.msrb.mxu0 %v268_v30  ;;  %270 = vmatmul.msk.bf16.vlgmr.msra.gmra.mxu1 %vm137_vm0, %v60_v26 }
  0x1a   :  { %271 = vmatmul.msk.bf16.vlgmr.msra.gmra.mxu2 %vm137_vm0, %v60_v26  ;;  %272 = vmatmul.msk.bf16.vlgmr.msra.gmra.mxu3 %vm137_vm0, %v60_v26 }
  0x1d   :  { %200 = vmatpush.bf16.msrb.mxu0 %v248_v31 }
  0x28   :  { %273 = vmatmul.msk.bf16.vlgmr.msrb.gmra.mxu0 %vm137_vm0, %v60_v26 }
  0x95   :  { %v150_v33 = vpop.f32.mrf.mxu0 }
  0x96   :  { %v163_v34 = vpop.f32.mrf.mxu1  ;;  %v151_v38 = vadd.f32 %v150_v33, %v75_v35 }
  0x97   :  { %v164_v39 = vadd.f32 %v163_v34, %v76_v36 }
  0x99   :  { %v206_v46 = vmax.f32 %v151_v38, %v164_v39 }
  0x9d   :  { %v176_v40 = vpop.f32.mrf.mxu2  ;;  %v152_v41 = vpop.f32.mrf.mxu0 }
  0x9e   :  { %v189_v42 = vpop.f32.mrf.mxu3  ;;  %v177_v43 = vadd.f32 %v176_v40, %v77_v37  ;;  %v165_v45 = vpop.f32.mrf.mxu1 }
  0x9f   :  { %v190_v48 = vadd.f32 %v189_v42, %v78_v44 }
  0xa0   :  { %v207_v47 = vmax.f32 %v206_v46, %v177_v43 }
  0xa2   :  { %v208_v53 = vmax.f32 %v207_v47, %v190_v48 }
  0xa5   :  { %v178_v50 = vpop.f32.mrf.mxu2  ;;  %v202_v52 = vpop.f32.mrf.mxu0 }
  0xa6   :  { %v191_v51 = vpop.f32.mrf.mxu3  ;;  %v203_v54 = vadd.f32 %v202_v52, %v79_v49 }
  0xa8   :  { %v209_v55 = vmax.f32 %v208_v53, %v203_v54 }
  0xaa   :  { %210 = vst [vmem:[#allocation8] sm:$0xff] %v209_v55 }
  0xab   :  { %221 = dma.vmem_to_hbm [thread:$0]  %s217_s2, 128, %s219_s30, [#allocation4]  }
  0xad   :  { %v204_v56 = vpop.f32.mrf.mxu0 }
  0xae   :  { %390 = dma.done.wait [#allocation4], 128  }
  0xaf   :  { %391 = vsyncadd [#allocation4], 4294967168 }
  0xb0   :  { %226 = vsyncpa [#allocation3], 1 }
  0xb1   :  { %227 = vsyncpa [#allocation6], 1 }
  0xb2   :  { %228 = vsyncpa [#allocation4], 1 }

</bundles_post_ra>
